<compile_context>
chip_gen: v7x
topology: tpu7x:2x2x1
jax: 0.10.0
libtpu: 0.0.40
codegen_flags: <defaults>
</compile_context>

<pallas_src>
import functools

import jax
import jax.numpy as jnp
from jax.experimental import pallas as pl
from jax.experimental.pallas import tpu as pltpu

_MIB = 1024 * 1024
_MAX_BLK = 32           # bounds the trace-time unrolled per-slice stage-2 loop


def _fft_l1_kernel(s_ref, t_ref, cwr_ref, cwi_ref, fh2_ref, out_ref, acc_ref, *,
                   blk, h, w, wk, compute_dtype):
    """Accumulates the Hermitian-weighted sum of |FFT2(s - t)| for BLK slices."""
    step = pl.program_id(1)
    f32 = jnp.float32

    @pl.when(step == 0)
    def _init():
        acc_ref[...] = jnp.zeros_like(acc_ref)

    # Difference in the matmul compute dtype (single cast when dtypes already match).
    if jnp.dtype(s_ref.dtype) == jnp.dtype(compute_dtype):
        d = s_ref[...] - t_ref[...]
    else:
        d = (s_ref[...].astype(f32) - t_ref[...].astype(f32)).astype(compute_dtype)
    dflat = d.reshape(blk * h, w)                      # free retile when h % 8 == 0

    # Stage 1 -- W-axis DFT (Hermitian-reduced) as two flat MXU matmuls.
    er = jnp.dot(dflat, cwr_ref[...], preferred_element_type=f32)   # (blk*h, wk)
    ei = jnp.dot(dflat, cwi_ref[...], preferred_element_type=f32)   # (blk*h, wk)
    if jnp.dtype(compute_dtype) != jnp.dtype(f32):
        er = er.astype(compute_dtype)
        ei = ei.astype(compute_dtype)

    # Stage 2 -- H-axis DFT, per slice, against the resident fh2 block (no
    # broadcast_to copies, no batched einsum).  Only sublane-axis slices below.
    fh2 = fh2_ref[...]                                 # (2h, h)
    msum = jnp.zeros((h, wk), f32)
    for b in range(blk):                               # trace-time unroll (blk capped)
        rows = slice(b * h, (b + 1) * h)
        zr = jnp.dot(fh2, er[rows, :], preferred_element_type=f32)   # (2h, wk)
        zi = jnp.dot(fh2, ei[rows, :], preferred_element_type=f32)   # (2h, wk)
        yr = zr[:h, :] - zi[h:, :]
        yi = zr[h:, :] + zi[:h, :]
        msum = msum + jnp.sqrt(yr * yr + yi * yi)

    # Element-wise VPU accumulation; cross-lane reduce deferred to the last step.
    acc_ref[...] += msum

    @pl.when(step == pl.num_programs(1) - 1)
    def _finalize():
        # Hermitian column weights: DC (and Nyquist for even W) once, others twice.
        col = jax.lax.broadcasted_iota(jnp.int32, (h, wk), 1)
        wgt = jnp.where(col == 0, 1.0, 2.0).astype(f32)
        if w % 2 == 0 and wk > 1:
            wgt = jnp.where(col == w // 2, 1.0, wgt)
        out_ref[...] = jnp.sum(acc_ref[...] * wgt, axis=(0, 1), keepdims=True)


def _dft_factors(h, w, wk, dtype):
    """A_W, B_W (w, wk) for the right multiply and fh2 = [A_H ; B_H] (2h, h) for the
    left multiply, with A = cos, B = sin of -2*pi*j*k/n (rfft columns only for W)."""
    jw = jnp.arange(w, dtype=jnp.float32)
    vw = jnp.arange(wk, dtype=jnp.float32)
    ang_w = (-2.0 * jnp.pi / w) * (jw[:, None] * vw[None, :])
    cwr = jnp.cos(ang_w).astype(dtype)
    cwi = jnp.sin(ang_w).astype(dtype)
    jh = jnp.arange(h, dtype=jnp.float32)
    ang_h = (-2.0 * jnp.pi / h) * (jh[:, None] * jh[None, :])
    fh2 = jnp.concatenate([jnp.cos(ang_h), jnp.sin(ang_h)], axis=0).astype(dtype)
    return cwr, cwi, fh2


def _vmem_budget_bytes():
    """~48 MiB on 64-MiB parts (v7x), ~100 MiB on 128-MiB parts (v5e/v6e)."""
    try:
        cap = getattr(pltpu.get_tpu_info(), "vmem_capacity_bytes", None)
        if isinstance(cap, int) and cap > 48 * _MIB:
            return int(min(cap - 16 * _MIB, 100 * _MIB))
    except Exception:
        pass
    return 48 * _MIB


def _num_tensorcores():
    """Best-effort TensorCore count; the fallback of 2 only adds a tiny amount of
    batch padding on single-TC parts while keeping dual-TC parts (v7x) parallel."""
    try:
        info = pltpu.get_tpu_info()
        for name in ("num_cores", "core_count", "num_tensorcores",
                     "cores_per_chip", "tensorcores_per_chip"):
            v = getattr(info, name, None)
            if isinstance(v, int) and v > 0:
                return v
    except Exception:
        pass
    return 2


def fft_l1_loss(source, target, *, blk=None, compute_dtype=jnp.bfloat16):
    """mean(|fft2(source) - fft2(target)|) over all N, C, H, W elements (NCHW)."""
    n, c, h, w = source.shape
    bsz = n * c
    wk = w // 2 + 1                        # Hermitian-reduced frequency columns
    s = source.reshape(bsz, h, w)          # original dtype; promoted inside the kernel
    t = target.reshape(bsz, h, w)

    in_bytes = jnp.dtype(source.dtype).itemsize
    cbytes = jnp.dtype(compute_dtype).itemsize
    vmem_budget = _vmem_budget_bytes()

    if blk is None:
        # Live bytes per slice per step: double-buffered s/t inputs + d + Er/Ei
        # (f32 + compute-dtype copies); fixed: DFT factors (double-buffered),
        # per-slice z/y/mag temporaries and the f32 accumulator.
        per_slice = h * w * (4 * in_bytes + cbytes) + h * wk * (8 + 2 * cbytes)
        fixed = 2 * (2 * w * wk + 2 * h * h) * cbytes + 40 * h * wk
        blk = (int(0.8 * vmem_budget) - fixed) // per_slice
    blk = int(max(1, min(blk, bsz, _MAX_BLK)))

    ncores_hw = _num_tensorcores()
    nblk_total = pl.cdiv(bsz, blk)
    ncore = ncores_hw if nblk_total >= ncores_hw else 1     # leading "parallel" axis
    nblk = pl.cdiv(nblk_total, ncore)                       # grid steps per core
    padded = ncore * nblk * blk
    if padded != bsz:                      # zero padding: |FFT2(0)| contributes 0
        s = jnp.pad(s, ((0, padded - bsz), (0, 0), (0, 0)))
        t = jnp.pad(t, ((0, padded - bsz), (0, 0), (0, 0)))

    cwr, cwi, fh2 = _dft_factors(h, w, wk, compute_dtype)
    kernel = functools.partial(_fft_l1_kernel, blk=blk, h=h, w=w, wk=wk,
                               compute_dtype=compute_dtype)

    cost = pl.CostEstimate(
        flops=int(padded * (4 * h * w * wk + 8 * h * h * wk + 10 * h * wk)),
        transcendentals=int(padded * h * wk),
        bytes_accessed=int(2 * padded * h * w * in_bytes
                           + (2 * w * wk + 2 * h * h) * cbytes + 4 * ncore),
    )

    partials = pl.pallas_call(
        kernel,
        out_shape=jax.ShapeDtypeStruct((ncore, 1), jnp.float32),
        grid=(ncore, nblk),
        in_specs=[
            pl.BlockSpec((blk, h, w), lambda cc, bb: (cc * nblk + bb, 0, 0)),
            pl.BlockSpec((blk, h, w), lambda cc, bb: (cc * nblk + bb, 0, 0)),
            pl.BlockSpec((w, wk), lambda cc, bb: (0, 0)),       # A_W   (resident)
            pl.BlockSpec((w, wk), lambda cc, bb: (0, 0)),       # B_W   (resident)
            pl.BlockSpec((2 * h, h), lambda cc, bb: (0, 0)),    # [A_H ; B_H]
        ],
        out_specs=pl.BlockSpec((1, 1), lambda cc, bb: (cc, 0)),
        scratch_shapes=[pltpu.VMEM((h, wk), jnp.float32)],      # f32 accumulator
        compiler_params=pltpu.CompilerParams(
            dimension_semantics=("parallel", "arbitrary"),
            vmem_limit_bytes=int(vmem_budget)),
        cost_estimate=cost,
    )(s, t, cwr, cwi, fh2)

    total = float(bsz * h * w)
    return jnp.sum(partials) / total


if __name__ == "__main__":
    key = jax.random.PRNGKey(0)
    k1, k2 = jax.random.split(key)
    source = jax.random.normal(k1, (2, 4, 16, 16), dtype=jnp.float32)   # NCHW
    target = jax.random.normal(k2, (2, 4, 16, 16), dtype=jnp.float32)

    # pure-JAX reference (same semantics as the PyTorch module)
    ref = jax.block_until_ready(
        jnp.mean(jnp.abs(jnp.fft.fft2(source) - jnp.fft.fft2(target))))

    # f32 DFT path: tight tolerance.
    loss_f32 = jax.block_until_ready(
        fft_l1_loss(source, target, compute_dtype=jnp.float32))
    assert jnp.allclose(loss_f32, ref, rtol=1e-3, atol=1e-3), (loss_f32, ref)

    # Multi-step / dual-core-grid path and the zero-padding path (f32, tight tol).
    loss_blk2 = jax.block_until_ready(
        fft_l1_loss(source, target, blk=2, compute_dtype=jnp.float32))
    assert jnp.allclose(loss_blk2, ref, rtol=1e-3, atol=1e-3), (loss_blk2, ref)
    loss_blk3 = jax.block_until_ready(
        fft_l1_loss(source, target, blk=3, compute_dtype=jnp.float32))
    assert jnp.allclose(loss_blk3, ref, rtol=1e-3, atol=1e-3), (loss_blk3, ref)

    # Default bf16-matmul / f32-accumulate path (fast on v5e/v6e/v7x): relaxed tol.
    loss_bf16 = jax.block_until_ready(fft_l1_loss(source, target))
    assert jnp.allclose(loss_bf16, ref, rtol=3e-2, atol=3e-2), (loss_bf16, ref)

    print("KERNEL_OK")
</pallas_src>

<mosaic_0001>
module attributes {stable_mosaic.version = 11 : i64} {
  func.func @_fft_l1_kernel(%arg0: i32, %arg1: i32, %arg2: memref<8x16x16xf32, #tpu.memory_space<vmem>>, %arg3: memref<8x16x16xf32, #tpu.memory_space<vmem>>, %arg4: memref<16x9xf32, #tpu.memory_space<vmem>>, %arg5: memref<16x9xf32, #tpu.memory_space<vmem>>, %arg6: memref<32x16xf32, #tpu.memory_space<vmem>>, %arg7: memref<1x1xf32, #tpu.memory_space<vmem>>, %arg8: memref<16x9xf32, #tpu.memory_space<vmem>>) attributes {dimension_semantics = [#tpu.dimension_semantics<parallel>, #tpu.dimension_semantics<arbitrary>], iteration_bounds = array<i64: 1, 1>, scalar_prefetch = 0 : i64, scratch_operands = 1 : i64, tpu.core_type = #tpu.core_type<tc>, window_params = [{transform_indices = @transform_0, window_bounds = array<i64: 8, 16, 16>}, {transform_indices = @transform_1, window_bounds = array<i64: 8, 16, 16>}, {pipeline_mode = #tpu.pipeline_mode<synchronous>, transform_indices = @transform_2, window_bounds = array<i64: 16, 9>}, {pipeline_mode = #tpu.pipeline_mode<synchronous>, transform_indices = @transform_3, window_bounds = array<i64: 16, 9>}, {pipeline_mode = #tpu.pipeline_mode<synchronous>, transform_indices = @transform_4, window_bounds = array<i64: 32, 16>}, {transform_indices = @transform_5, window_bounds = array<i64: 1, 1>}]} {
    %c0_i32 = arith.constant 0 : i32
    %0 = arith.cmpi eq, %arg1, %c0_i32 : i32
    %1 = arith.extui %0 : i1 to i32
    %c0_i32_0 = arith.constant 0 : i32
    %2 = arith.cmpi ne, %1, %c0_i32_0 : i32
    scf.if %2 {
      %cst_36 = arith.constant 0.000000e+00 : f32
      %139 = vector.broadcast %cst_36 : f32 to vector<16x9xf32>
      %c0_37 = arith.constant 0 : index
      %c0_38 = arith.constant 0 : index
      %140 = vector.load %arg8[%c0_37, %c0_38] : memref<16x9xf32, #tpu.memory_space<vmem>>, vector<16x9xf32>
      tpu.vector_store %arg8[%c0_37, %c0_38], %139 {strides = array<i32>} : memref<16x9xf32, #tpu.memory_space<vmem>>, vector<16x9xf32>,
    } else {
    }
    %c0 = arith.constant 0 : index
    %c0_1 = arith.constant 0 : index
    %c0_2 = arith.constant 0 : index
    %3 = vector.load %arg2[%c0, %c0_1, %c0_2] : memref<8x16x16xf32, #tpu.memory_space<vmem>>, vector<8x16x16xf32>
    %c0_3 = arith.constant 0 : index
    %c0_4 = arith.constant 0 : index
    %c0_5 = arith.constant 0 : index
    %4 = vector.load %arg3[%c0_3, %c0_4, %c0_5] : memref<8x16x16xf32, #tpu.memory_space<vmem>>, vector<8x16x16xf32>
    %5 = arith.subf %3, %4 : vector<8x16x16xf32>
    %6 = vector.shape_cast %5 : vector<8x16x16xf32> to vector<128x16xf32>
    %c0_6 = arith.constant 0 : index
    %c0_7 = arith.constant 0 : index
    %7 = vector.load %arg4[%c0_6, %c0_7] : memref<16x9xf32, #tpu.memory_space<vmem>>, vector<16x9xf32>
    %cst = arith.constant dense<0.000000e+00> : vector<128x9xf32>
    %8 = tpu.matmul %6, %7, %cst {dimension_numbers = #tpu.dot_dimension_numbers<[1], [0], [0], [1], [0, 0, 1, 1], [], []>} : vector<128x16xf32>, vector<16x9xf32>, vector<128x9xf32> -> vector<128x9xf32>
    %c0_8 = arith.constant 0 : index
    %c0_9 = arith.constant 0 : index
    %9 = vector.load %arg5[%c0_8, %c0_9] : memref<16x9xf32, #tpu.memory_space<vmem>>, vector<16x9xf32>
    %cst_10 = arith.constant dense<0.000000e+00> : vector<128x9xf32>
    %10 = tpu.matmul %6, %9, %cst_10 {dimension_numbers = #tpu.dot_dimension_numbers<[1], [0], [0], [1], [0, 0, 1, 1], [], []>} : vector<128x16xf32>, vector<16x9xf32>, vector<128x9xf32> -> vector<128x9xf32>
    %c0_11 = arith.constant 0 : index
    %c0_12 = arith.constant 0 : index
    %11 = vector.load %arg6[%c0_11, %c0_12] : memref<32x16xf32, #tpu.memory_space<vmem>>, vector<32x16xf32>
    %cst_13 = arith.constant 0.000000e+00 : f32
    %12 = vector.broadcast %cst_13 : f32 to vector<16x9xf32>
    %13 = vector.extract_strided_slice %8 {offsets = [0, 0], sizes = [16, 9], strides = [1, 1]} : vector<128x9xf32> to vector<16x9xf32>
    %cst_14 = arith.constant dense<0.000000e+00> : vector<32x9xf32>
    %14 = tpu.matmul %11, %13, %cst_14 {dimension_numbers = #tpu.dot_dimension_numbers<[1], [0], [0], [1], [0, 0, 1, 1], [], []>} : vector<32x16xf32>, vector<16x9xf32>, vector<32x9xf32> -> vector<32x9xf32>
    %15 = vector.extract_strided_slice %10 {offsets = [0, 0], sizes = [16, 9], strides = [1, 1]} : vector<128x9xf32> to vector<16x9xf32>
    %cst_15 = arith.constant dense<0.000000e+00> : vector<32x9xf32>
    %16 = tpu.matmul %11, %15, %cst_15 {dimension_numbers = #tpu.dot_dimension_numbers<[1], [0], [0], [1], [0, 0, 1, 1], [], []>} : vector<32x16xf32>, vector<16x9xf32>, vector<32x9xf32> -> vector<32x9xf32>
    %17 = vector.extract_strided_slice %14 {offsets = [0, 0], sizes = [16, 9], strides = [1, 1]} : vector<32x9xf32> to vector<16x9xf32>
    %18 = vector.extract_strided_slice %16 {offsets = [16, 0], sizes = [16, 9], strides = [1, 1]} : vector<32x9xf32> to vector<16x9xf32>
    %19 = arith.subf %17, %18 : vector<16x9xf32>
    %20 = vector.extract_strided_slice %14 {offsets = [16, 0], sizes = [16, 9], strides = [1, 1]} : vector<32x9xf32> to vector<16x9xf32>
    %21 = vector.extract_strided_slice %16 {offsets = [0, 0], sizes = [16, 9], strides = [1, 1]} : vector<32x9xf32> to vector<16x9xf32>
    %22 = arith.addf %20, %21 : vector<16x9xf32>
    %23 = arith.mulf %19, %19 : vector<16x9xf32>
    %24 = arith.mulf %22, %22 : vector<16x9xf32>
    %25 = arith.addf %23, %24 : vector<16x9xf32>
    %26 = math.sqrt %25 : vector<16x9xf32>
    %27 = arith.addf %12, %26 : vector<16x9xf32>
    %28 = vector.extract_strided_slice %8 {offsets = [16, 0], sizes = [16, 9], strides = [1, 1]} : vector<128x9xf32> to vector<16x9xf32>
    %cst_16 = arith.constant dense<0.000000e+00> : vector<32x9xf32>
    %29 = tpu.matmul %11, %28, %cst_16 {dimension_numbers = #tpu.dot_dimension_numbers<[1], [0], [0], [1], [0, 0, 1, 1], [], []>} : vector<32x16xf32>, vector<16x9xf32>, vector<32x9xf32> -> vector<32x9xf32>
    %30 = vector.extract_strided_slice %10 {offsets = [16, 0], sizes = [16, 9], strides = [1, 1]} : vector<128x9xf32> to vector<16x9xf32>
    %cst_17 = arith.constant dense<0.000000e+00> : vector<32x9xf32>
    %31 = tpu.matmul %11, %30, %cst_17 {dimension_numbers = #tpu.dot_dimension_numbers<[1], [0], [0], [1], [0, 0, 1, 1], [], []>} : vector<32x16xf32>, vector<16x9xf32>, vector<32x9xf32> -> vector<32x9xf32>
    %32 = vector.extract_strided_slice %29 {offsets = [0, 0], sizes = [16, 9], strides = [1, 1]} : vector<32x9xf32> to vector<16x9xf32>
    %33 = vector.extract_strided_slice %31 {offsets = [16, 0], sizes = [16, 9], strides = [1, 1]} : vector<32x9xf32> to vector<16x9xf32>
    %34 = arith.subf %32, %33 : vector<16x9xf32>
    %35 = vector.extract_strided_slice %29 {offsets = [16, 0], sizes = [16, 9], strides = [1, 1]} : vector<32x9xf32> to vector<16x9xf32>
    %36 = vector.extract_strided_slice %31 {offsets = [0, 0], sizes = [16, 9], strides = [1, 1]} : vector<32x9xf32> to vector<16x9xf32>
    %37 = arith.addf %35, %36 : vector<16x9xf32>
    %38 = arith.mulf %34, %34 : vector<16x9xf32>
    %39 = arith.mulf %37, %37 : vector<16x9xf32>
    %40 = arith.addf %38, %39 : vector<16x9xf32>
    %41 = math.sqrt %40 : vector<16x9xf32>
    %42 = arith.addf %27, %41 : vector<16x9xf32>
    %43 = vector.extract_strided_slice %8 {offsets = [32, 0], sizes = [16, 9], strides = [1, 1]} : vector<128x9xf32> to vector<16x9xf32>
    %cst_18 = arith.constant dense<0.000000e+00> : vector<32x9xf32>
    %44 = tpu.matmul %11, %43, %cst_18 {dimension_numbers = #tpu.dot_dimension_numbers<[1], [0], [0], [1], [0, 0, 1, 1], [], []>} : vector<32x16xf32>, vector<16x9xf32>, vector<32x9xf32> -> vector<32x9xf32>
    %45 = vector.extract_strided_slice %10 {offsets = [32, 0], sizes = [16, 9], strides = [1, 1]} : vector<128x9xf32> to vector<16x9xf32>
    %cst_19 = arith.constant dense<0.000000e+00> : vector<32x9xf32>
    %46 = tpu.matmul %11, %45, %cst_19 {dimension_numbers = #tpu.dot_dimension_numbers<[1], [0], [0], [1], [0, 0, 1, 1], [], []>} : vector<32x16xf32>, vector<16x9xf32>, vector<32x9xf32> -> vector<32x9xf32>
    %47 = vector.extract_strided_slice %44 {offsets = [0, 0], sizes = [16, 9], strides = [1, 1]} : vector<32x9xf32> to vector<16x9xf32>
    %48 = vector.extract_strided_slice %46 {offsets = [16, 0], sizes = [16, 9], strides = [1, 1]} : vector<32x9xf32> to vector<16x9xf32>
    %49 = arith.subf %47, %48 : vector<16x9xf32>
    %50 = vector.extract_strided_slice %44 {offsets = [16, 0], sizes = [16, 9], strides = [1, 1]} : vector<32x9xf32> to vector<16x9xf32>
    %51 = vector.extract_strided_slice %46 {offsets = [0, 0], sizes = [16, 9], strides = [1, 1]} : vector<32x9xf32> to vector<16x9xf32>
    %52 = arith.addf %50, %51 : vector<16x9xf32>
    %53 = arith.mulf %49, %49 : vector<16x9xf32>
    %54 = arith.mulf %52, %52 : vector<16x9xf32>
    %55 = arith.addf %53, %54 : vector<16x9xf32>
    %56 = math.sqrt %55 : vector<16x9xf32>
    %57 = arith.addf %42, %56 : vector<16x9xf32>
    %58 = vector.extract_strided_slice %8 {offsets = [48, 0], sizes = [16, 9], strides = [1, 1]} : vector<128x9xf32> to vector<16x9xf32>
    %cst_20 = arith.constant dense<0.000000e+00> : vector<32x9xf32>
    %59 = tpu.matmul %11, %58, %cst_20 {dimension_numbers = #tpu.dot_dimension_numbers<[1], [0], [0], [1], [0, 0, 1, 1], [], []>} : vector<32x16xf32>, vector<16x9xf32>, vector<32x9xf32> -> vector<32x9xf32>
    %60 = vector.extract_strided_slice %10 {offsets = [48, 0], sizes = [16, 9], strides = [1, 1]} : vector<128x9xf32> to vector<16x9xf32>
    %cst_21 = arith.constant dense<0.000000e+00> : vector<32x9xf32>
    %61 = tpu.matmul %11, %60, %cst_21 {dimension_numbers = #tpu.dot_dimension_numbers<[1], [0], [0], [1], [0, 0, 1, 1], [], []>} : vector<32x16xf32>, vector<16x9xf32>, vector<32x9xf32> -> vector<32x9xf32>
    %62 = vector.extract_strided_slice %59 {offsets = [0, 0], sizes = [16, 9], strides = [1, 1]} : vector<32x9xf32> to vector<16x9xf32>
    %63 = vector.extract_strided_slice %61 {offsets = [16, 0], sizes = [16, 9], strides = [1, 1]} : vector<32x9xf32> to vector<16x9xf32>
    %64 = arith.subf %62, %63 : vector<16x9xf32>
    %65 = vector.extract_strided_slice %59 {offsets = [16, 0], sizes = [16, 9], strides = [1, 1]} : vector<32x9xf32> to vector<16x9xf32>
    %66 = vector.extract_strided_slice %61 {offsets = [0, 0], sizes = [16, 9], strides = [1, 1]} : vector<32x9xf32> to vector<16x9xf32>
    %67 = arith.addf %65, %66 : vector<16x9xf32>
    %68 = arith.mulf %64, %64 : vector<16x9xf32>
    %69 = arith.mulf %67, %67 : vector<16x9xf32>
    %70 = arith.addf %68, %69 : vector<16x9xf32>
    %71 = math.sqrt %70 : vector<16x9xf32>
    %72 = arith.addf %57, %71 : vector<16x9xf32>
    %73 = vector.extract_strided_slice %8 {offsets = [64, 0], sizes = [16, 9], strides = [1, 1]} : vector<128x9xf32> to vector<16x9xf32>
    %cst_22 = arith.constant dense<0.000000e+00> : vector<32x9xf32>
    %74 = tpu.matmul %11, %73, %cst_22 {dimension_numbers = #tpu.dot_dimension_numbers<[1], [0], [0], [1], [0, 0, 1, 1], [], []>} : vector<32x16xf32>, vector<16x9xf32>, vector<32x9xf32> -> vector<32x9xf32>
    %75 = vector.extract_strided_slice %10 {offsets = [64, 0], sizes = [16, 9], strides = [1, 1]} : vector<128x9xf32> to vector<16x9xf32>
    %cst_23 = arith.constant dense<0.000000e+00> : vector<32x9xf32>
    %76 = tpu.matmul %11, %75, %cst_23 {dimension_numbers = #tpu.dot_dimension_numbers<[1], [0], [0], [1], [0, 0, 1, 1], [], []>} : vector<32x16xf32>, vector<16x9xf32>, vector<32x9xf32> -> vector<32x9xf32>
    %77 = vector.extract_strided_slice %74 {offsets = [0, 0], sizes = [16, 9], strides = [1, 1]} : vector<32x9xf32> to vector<16x9xf32>
    %78 = vector.extract_strided_slice %76 {offsets = [16, 0], sizes = [16, 9], strides = [1, 1]} : vector<32x9xf32> to vector<16x9xf32>
    %79 = arith.subf %77, %78 : vector<16x9xf32>
    %80 = vector.extract_strided_slice %74 {offsets = [16, 0], sizes = [16, 9], strides = [1, 1]} : vector<32x9xf32> to vector<16x9xf32>
    %81 = vector.extract_strided_slice %76 {offsets = [0, 0], sizes = [16, 9], strides = [1, 1]} : vector<32x9xf32> to vector<16x9xf32>
    %82 = arith.addf %80, %81 : vector<16x9xf32>
    %83 = arith.mulf %79, %79 : vector<16x9xf32>
    %84 = arith.mulf %82, %82 : vector<16x9xf32>
    %85 = arith.addf %83, %84 : vector<16x9xf32>
    %86 = math.sqrt %85 : vector<16x9xf32>
    %87 = arith.addf %72, %86 : vector<16x9xf32>
    %88 = vector.extract_strided_slice %8 {offsets = [80, 0], sizes = [16, 9], strides = [1, 1]} : vector<128x9xf32> to vector<16x9xf32>
    %cst_24 = arith.constant dense<0.000000e+00> : vector<32x9xf32>
    %89 = tpu.matmul %11, %88, %cst_24 {dimension_numbers = #tpu.dot_dimension_numbers<[1], [0], [0], [1], [0, 0, 1, 1], [], []>} : vector<32x16xf32>, vector<16x9xf32>, vector<32x9xf32> -> vector<32x9xf32>
    %90 = vector.extract_strided_slice %10 {offsets = [80, 0], sizes = [16, 9], strides = [1, 1]} : vector<128x9xf32> to vector<16x9xf32>
    %cst_25 = arith.constant dense<0.000000e+00> : vector<32x9xf32>
    %91 = tpu.matmul %11, %90, %cst_25 {dimension_numbers = #tpu.dot_dimension_numbers<[1], [0], [0], [1], [0, 0, 1, 1], [], []>} : vector<32x16xf32>, vector<16x9xf32>, vector<32x9xf32> -> vector<32x9xf32>
    %92 = vector.extract_strided_slice %89 {offsets = [0, 0], sizes = [16, 9], strides = [1, 1]} : vector<32x9xf32> to vector<16x9xf32>
    %93 = vector.extract_strided_slice %91 {offsets = [16, 0], sizes = [16, 9], strides = [1, 1]} : vector<32x9xf32> to vector<16x9xf32>
    %94 = arith.subf %92, %93 : vector<16x9xf32>
    %95 = vector.extract_strided_slice %89 {offsets = [16, 0], sizes = [16, 9], strides = [1, 1]} : vector<32x9xf32> to vector<16x9xf32>
    %96 = vector.extract_strided_slice %91 {offsets = [0, 0], sizes = [16, 9], strides = [1, 1]} : vector<32x9xf32> to vector<16x9xf32>
    %97 = arith.addf %95, %96 : vector<16x9xf32>
    %98 = arith.mulf %94, %94 : vector<16x9xf32>
    %99 = arith.mulf %97, %97 : vector<16x9xf32>
    %100 = arith.addf %98, %99 : vector<16x9xf32>
    %101 = math.sqrt %100 : vector<16x9xf32>
    %102 = arith.addf %87, %101 : vector<16x9xf32>
    %103 = vector.extract_strided_slice %8 {offsets = [96, 0], sizes = [16, 9], strides = [1, 1]} : vector<128x9xf32> to vector<16x9xf32>
    %cst_26 = arith.constant dense<0.000000e+00> : vector<32x9xf32>
    %104 = tpu.matmul %11, %103, %cst_26 {dimension_numbers = #tpu.dot_dimension_numbers<[1], [0], [0], [1], [0, 0, 1, 1], [], []>} : vector<32x16xf32>, vector<16x9xf32>, vector<32x9xf32> -> vector<32x9xf32>
    %105 = vector.extract_strided_slice %10 {offsets = [96, 0], sizes = [16, 9], strides = [1, 1]} : vector<128x9xf32> to vector<16x9xf32>
    %cst_27 = arith.constant dense<0.000000e+00> : vector<32x9xf32>
    %106 = tpu.matmul %11, %105, %cst_27 {dimension_numbers = #tpu.dot_dimension_numbers<[1], [0], [0], [1], [0, 0, 1, 1], [], []>} : vector<32x16xf32>, vector<16x9xf32>, vector<32x9xf32> -> vector<32x9xf32>
    %107 = vector.extract_strided_slice %104 {offsets = [0, 0], sizes = [16, 9], strides = [1, 1]} : vector<32x9xf32> to vector<16x9xf32>
    %108 = vector.extract_strided_slice %106 {offsets = [16, 0], sizes = [16, 9], strides = [1, 1]} : vector<32x9xf32> to vector<16x9xf32>
    %109 = arith.subf %107, %108 : vector<16x9xf32>
    %110 = vector.extract_strided_slice %104 {offsets = [16, 0], sizes = [16, 9], strides = [1, 1]} : vector<32x9xf32> to vector<16x9xf32>
    %111 = vector.extract_strided_slice %106 {offsets = [0, 0], sizes = [16, 9], strides = [1, 1]} : vector<32x9xf32> to vector<16x9xf32>
    %112 = arith.addf %110, %111 : vector<16x9xf32>
    %113 = arith.mulf %109, %109 : vector<16x9xf32>
    %114 = arith.mulf %112, %112 : vector<16x9xf32>
    %115 = arith.addf %113, %114 : vector<16x9xf32>
    %116 = math.sqrt %115 : vector<16x9xf32>
    %117 = arith.addf %102, %116 : vector<16x9xf32>
    %118 = vector.extract_strided_slice %8 {offsets = [112, 0], sizes = [16, 9], strides = [1, 1]} : vector<128x9xf32> to vector<16x9xf32>
    %cst_28 = arith.constant dense<0.000000e+00> : vector<32x9xf32>
    %119 = tpu.matmul %11, %118, %cst_28 {dimension_numbers = #tpu.dot_dimension_numbers<[1], [0], [0], [1], [0, 0, 1, 1], [], []>} : vector<32x16xf32>, vector<16x9xf32>, vector<32x9xf32> -> vector<32x9xf32>
    %120 = vector.extract_strided_slice %10 {offsets = [112, 0], sizes = [16, 9], strides = [1, 1]} : vector<128x9xf32> to vector<16x9xf32>
    %cst_29 = arith.constant dense<0.000000e+00> : vector<32x9xf32>
    %121 = tpu.matmul %11, %120, %cst_29 {dimension_numbers = #tpu.dot_dimension_numbers<[1], [0], [0], [1], [0, 0, 1, 1], [], []>} : vector<32x16xf32>, vector<16x9xf32>, vector<32x9xf32> -> vector<32x9xf32>
    %122 = vector.extract_strided_slice %119 {offsets = [0, 0], sizes = [16, 9], strides = [1, 1]} : vector<32x9xf32> to vector<16x9xf32>
    %123 = vector.extract_strided_slice %121 {offsets = [16, 0], sizes = [16, 9], strides = [1, 1]} : vector<32x9xf32> to vector<16x9xf32>
    %124 = arith.subf %122, %123 : vector<16x9xf32>
    %125 = vector.extract_strided_slice %119 {offsets = [16, 0], sizes = [16, 9], strides = [1, 1]} : vector<32x9xf32> to vector<16x9xf32>
    %126 = vector.extract_strided_slice %121 {offsets = [0, 0], sizes = [16, 9], strides = [1, 1]} : vector<32x9xf32> to vector<16x9xf32>
    %127 = arith.addf %125, %126 : vector<16x9xf32>
    %128 = arith.mulf %124, %124 : vector<16x9xf32>
    %129 = arith.mulf %127, %127 : vector<16x9xf32>
    %130 = arith.addf %128, %129 : vector<16x9xf32>
    %131 = math.sqrt %130 : vector<16x9xf32>
    %132 = arith.addf %117, %131 : vector<16x9xf32>
    %c0_30 = arith.constant 0 : index
    %c0_31 = arith.constant 0 : index
    %133 = vector.load %arg8[%c0_30, %c0_31] : memref<16x9xf32, #tpu.memory_space<vmem>>, vector<16x9xf32>
    %134 = arith.addf %133, %132 : vector<16x9xf32>
    %c0_32 = arith.constant 0 : index
    %c0_33 = arith.constant 0 : index
    %135 = vector.load %arg8[%c0_32, %c0_33] : memref<16x9xf32, #tpu.memory_space<vmem>>, vector<16x9xf32>
    tpu.vector_store %arg8[%c0_32, %c0_33], %134 {strides = array<i32>} : memref<16x9xf32, #tpu.memory_space<vmem>>, vector<16x9xf32>,
    %c0_i32_34 = arith.constant 0 : i32
    %136 = arith.cmpi eq, %arg1, %c0_i32_34 : i32
    %137 = arith.extui %136 : i1 to i32
    %c0_i32_35 = arith.constant 0 : i32
    %138 = arith.cmpi ne, %137, %c0_i32_35 : i32
    scf.if %138 {
      %139 = tpu.iota {dimensions = array<i32: 1>} : vector<16x9xi32>
      %c0_i32_36 = arith.constant 0 : i32
      %140 = vector.broadcast %c0_i32_36 : i32 to vector<16x9xi32>
      %141 = arith.cmpi eq, %139, %140 : vector<16x9xi32>
      %cst_37 = arith.constant 1.000000e+00 : f32
      %cst_38 = arith.constant 2.000000e+00 : f32
      %142 = vector.broadcast %cst_37 : f32 to vector<16x9xf32>
      %143 = vector.broadcast %cst_38 : f32 to vector<16x9xf32>
      %144 = arith.select %141, %142, %143 : vector<16x9xi1>, vector<16x9xf32>
      %c8_i32 = arith.constant 8 : i32
      %145 = vector.broadcast %c8_i32 : i32 to vector<16x9xi32>
      %146 = arith.cmpi eq, %139, %145 : vector<16x9xi32>
      %cst_39 = arith.constant 1.000000e+00 : f32
      %147 = vector.broadcast %cst_39 : f32 to vector<16x9xf32>
      %148 = arith.select %146, %147, %144 : vector<16x9xi1>, vector<16x9xf32>
      %c0_40 = arith.constant 0 : index
      %c0_41 = arith.constant 0 : index
      %149 = vector.load %arg8[%c0_40, %c0_41] : memref<16x9xf32, #tpu.memory_space<vmem>>, vector<16x9xf32>
      %150 = arith.mulf %149, %148 : vector<16x9xf32>
      %151 = vector.shape_cast %150 : vector<16x9xf32> to vector<1x16x9xf32>
      %cst_42 = arith.constant dense<0.000000e+00> : vector<1xf32>
      %152 = vector.multi_reduction <add>, %151, %cst_42 [1, 2] : vector<1x16x9xf32> to vector<1xf32>
      %153 = vector.shape_cast %152 : vector<1xf32> to vector<1x1x1xf32>
      %154 = vector.extract %153[0, 0, 0] : f32 from vector<1x1x1xf32>
      %155 = vector.broadcast %154 : f32 to vector<1x1xf32>
      %c0_43 = arith.constant 0 : index
      %c0_44 = arith.constant 0 : index
      %156 = vector.load %arg7[%c0_43, %c0_44] : memref<1x1xf32, #tpu.memory_space<vmem>>, vector<1x1xf32>
      tpu.vector_store %arg7[%c0_43, %c0_44], %155 {strides = array<i32>} : memref<1x1xf32, #tpu.memory_space<vmem>>, vector<1x1xf32>,
    } else {
    }
    return
  }
  func.func @transform_0(%arg0: i32, %arg1: i32) -> (i32, i32, i32) {
    %c1_i32 = arith.constant 1 : i32
    %0 = arith.muli %arg0, %c1_i32 : i32
    %1 = arith.addi %0, %arg1 : i32
    %c0_i32 = arith.constant 0 : i32
    %c0_i32_0 = arith.constant 0 : i32
    %c0_i32_1 = arith.constant 0 : i32
    return %1, %c0_i32, %c0_i32_0 : i32, i32, i32
  }
  func.func @transform_1(%arg0: i32, %arg1: i32) -> (i32, i32, i32) {
    %c1_i32 = arith.constant 1 : i32
    %0 = arith.muli %arg0, %c1_i32 : i32
    %1 = arith.addi %0, %arg1 : i32
    %c0_i32 = arith.constant 0 : i32
    %c0_i32_0 = arith.constant 0 : i32
    %c0_i32_1 = arith.constant 0 : i32
    return %1, %c0_i32, %c0_i32_0 : i32, i32, i32
  }
  func.func @transform_2(%arg0: i32, %arg1: i32) -> (i32, i32) {
    %c0_i32 = arith.constant 0 : i32
    %c0_i32_0 = arith.constant 0 : i32
    %c0_i32_1 = arith.constant 0 : i32
    return %c0_i32, %c0_i32_0 : i32, i32
  }
  func.func @transform_3(%arg0: i32, %arg1: i32) -> (i32, i32) {
    %c0_i32 = arith.constant 0 : i32
    %c0_i32_0 = arith.constant 0 : i32
    %c0_i32_1 = arith.constant 0 : i32
    return %c0_i32, %c0_i32_0 : i32, i32
  }
  func.func @transform_4(%arg0: i32, %arg1: i32) -> (i32, i32) {
    %c0_i32 = arith.constant 0 : i32
    %c0_i32_0 = arith.constant 0 : i32
    %c0_i32_1 = arith.constant 0 : i32
    return %c0_i32, %c0_i32_0 : i32, i32
  }
  func.func @transform_5(%arg0: i32, %arg1: i32) -> (i32, i32) {
    %c0_i32 = arith.constant 0 : i32
    %c0_i32_0 = arith.constant 0 : i32
    return %arg0, %c0_i32 : i32, i32
  }
}

</mosaic_0001>

<bundles_post_ra>
// kernel: tpu_custom_call.1
= control target key start
LH: loop header
LB: loop body
LE: loop exit
PB: predicated region body
PF: predicated region fallthrough
CT: control target
= control target key end

     0   :  { %10 = vsyncpa [#allocation4], 0  ;;  %s3041_s0 = inlined_call_operand.hbm [shape: f32[8,16,16], index: 0, kind: input, shape index: {}]   ;;  %s3042_s1 = inlined_call_operand.hbm [shape: f32[8,16,16], index: 1, kind: input, shape index: {}]   ;;  %s3043_s2 = inlined_call_operand.vmem [shape: f32[16,9], index: 2, kind: input, shape index: {}]   ;;  %s3044_s3 = inlined_call_operand.vmem [shape: f32[16,9], index: 3, kind: input, shape index: {}]   ;;  %s3045_s4 = inlined_call_operand.vmem [shape: f32[32,16], index: 4, kind: input, shape index: {}]   ;;  %s3046_s5 = inlined_call_operand.hbm [shape: f32[1,1], index: 5, kind: output, shape index: {}]  }
   0x1   :  { %11 = vsyncpa [#allocation7], 0 }
   0x2   :  { %12 = vsyncpa [#allocation5], 0  ;;  %s2741_s18 = smov [#allocation3]   ;;  %s2669_s22 = scalar_lea.hbm %s3041_s0, 2048 }
   0x3   :  { %s23_s19 = sshll.u32 %s2741_s18, 4  ;;  %p2670_p0 = scmp.ne.s32.totalorder %s3041_s0, %s2669_s22  ;;  %s24_s19 = int_to_ptr.vmem [resolvable:$true] %s23_s19 }
   0x4   :  { %p2673_p1 = scmp.lt.u32.totalorder %s2669_s22, %s3041_s0 }
   0x6   :  { %p2675_p2 = pnand %p2673_p1, %p2670_p0 }
   0x8   :  { %2678 = shalt.err (!%p2675_p2)
}
   0x9   :  { %s2679_s27 = scalar_lea.vmem %s24_s19, 2048  ;;  %p2684_p4 = scmp.lt.s32.totalorder %s24_s19, %s24_s19 }
   0xa   :  { %p2680_p3 = scmp.ne.s32.totalorder %s24_s19, %s2679_s27  ;;  %p2685_p5 = scmp.lt.s32.totalorder %s2679_s27, %s2679_s27 }
   0xc   :  { %p2686_p6 = por %p2685_p5, %p2684_p4 }
   0xe   :  { %p2687_p7 = pnand %p2686_p6, %p2680_p3 }
  0x10   :  { %2690 = shalt.err (!%p2687_p7)
}
  0x11   :  { %s2742_s28 = smov 128   ;;  %s2743_s29 = smov 8  }
  0x12   :  { %29 = dma.hbm_to_vmem [thread:$0]  %s3041_s0, 2048, %s24_s19, [#allocation4], %s2742_s28, %s2742_s28, %s2743_s29  }
  0x13   :  { %s2744_s7 = smov [#allocation6]   ;;  %s2691_s11 = scalar_lea.hbm %s3042_s1, 2048 }
  0x14   :  { %s40_s8 = sshll.u32 %s2744_s7, 4  ;;  %p2692_p8 = scmp.ne.s32.totalorder %s3042_s1, %s2691_s11  ;;  %s41_s8 = int_to_ptr.vmem [resolvable:$true] %s40_s8 }
  0x15   :  { %p2695_p9 = scmp.lt.u32.totalorder %s2691_s11, %s3042_s1 }
  0x17   :  { %p2697_p10 = pnand %p2695_p9, %p2692_p8 }
  0x19   :  { %2700 = shalt.err (!%p2697_p10)
}
  0x1a   :  { %s2701_s16 = scalar_lea.vmem %s41_s8, 2048  ;;  %p2706_p12 = scmp.lt.s32.totalorder %s41_s8, %s41_s8 }
  0x1b   :  { %p2702_p11 = scmp.ne.s32.totalorder %s41_s8, %s2701_s16  ;;  %p2707_p13 = scmp.lt.s32.totalorder %s2701_s16, %s2701_s16 }
  0x1d   :  { %p2708_p0 = por %p2707_p13, %p2706_p12 }
  0x1f   :  { %p2709_p1 = pnand %p2708_p0, %p2702_p11 }
  0x21   :  { %2712 = shalt.err (!%p2709_p1)
}
  0x22   :  { %46 = dma.hbm_to_vmem [thread:$0]  %s3042_s1, 2048, %s41_s8, [#allocation7], %s2742_s28, %s2742_s28, %s2743_s29  }
  0x23   :  { %2735 = dma.done.wait [#allocation4], 2048  }
  0x24   :  { %2736 = vsyncadd [#allocation4], 4294965248 }
  0x25   :  { %2737 = dma.done.wait [#allocation7], 2048  }
  0x26   :  { %2738 = vsyncadd [#allocation7], 4294965248  ;;  %v118_v0 = vld [vmem:[%s3043_s2] sm:$0xff]  ;;  %v119_v1 = vld [vmem:[%s3043_s2 + $0x8] sm:$0xff]  ;;  %vm120_vm0 = vcmask 130048   ;;  %vm67_vm1 = vcmask 72704  }
  0x27   :  { %v70_v2 = vld [vmem:[#allocation3] sm:$0xff]  ;;  %v2540_v3 = vpack.c.bf16 %v119_v1, %v118_v0  ;;  %v71_v5 = vld [vmem:[#allocation3 + $0x8] sm:$0xff]  ;;  %v72_v8 = vld [vmem:[#allocation3 + $0x10] sm:$0xff] }
  0x28   :  { %v86_v4 = vld [vmem:[#allocation6] sm:$0xff]  ;;  %v87_v6 = vld [vmem:[#allocation6 + $0x8] sm:$0xff]  ;;  %v88_v9 = vld [vmem:[#allocation6 + $0x10] sm:$0xff] }
  0x29   :  { %v102_v7 = vsub.f32 %v70_v2, %v86_v4  ;;  %2541 = vmatprep.subr.bf16.mxu0 %v2540_v3  ;;  %v103_v10 = vsub.f32 %v71_v5, %v87_v6  ;;  %v314_v11 = vld [vmem:[%s3044_s3] sm:$0xff]  ;;  %v315_v12 = vld [vmem:[%s3044_s3 + $0x8] sm:$0xff]  ;;  %v104_v13 = vsub.f32 %v72_v8, %v88_v9  ;;  %v74_v17 = vld [vmem:[#allocation3 + $0x20] sm:$0xff] }
  0x2a   :  { %2543 = vmatpush3.bf16.msra.mxu0 %v2540_v3  ;;  %v73_v14 = vld [vmem:[#allocation3 + $0x18] sm:$0xff]  ;;  %v2544_v16 = vpack.c.bf16 %v315_v12, %v314_v11  ;;  %v90_v18 = vld [vmem:[#allocation6 + $0x20] sm:$0xff]  ;;  %v75_v21 = vld [vmem:[#allocation3 + $0x28] sm:$0xff] }
  0x2b   :  { %2328 = vmatprep.mubr.msk.f32.mxu0 %vm120_vm0, %v102_v7  ;;  %v89_v15 = vld [vmem:[#allocation6 + $0x18] sm:$0xff]  ;;  %2356 = vmatprep.mubr.msk.f32.mxu1 %vm120_vm0, %v102_v7  ;;  %v106_v20 = vsub.f32 %v74_v17, %v90_v18  ;;  %v91_v22 = vld [vmem:[#allocation6 + $0x28] sm:$0xff]  ;;  %v76_v23 = vld [vmem:[#allocation3 + $0x30] sm:$0xff] }
  0x2c   :  { %2545 = vmatprep.subr.bf16.mxu1 %v2544_v16  ;;  %v105_v19 = vsub.f32 %v73_v14, %v89_v15  ;;  %v92_v24 = vld [vmem:[#allocation6 + $0x30] sm:$0xff]  ;;  %v107_v25 = vsub.f32 %v75_v21, %v91_v22  ;;  %v77_v27 = vld [vmem:[#allocation3 + $0x38] sm:$0xff]  ;;  %v78_v29 = vld [vmem:[#allocation3 + $0x40] sm:$0xff] }
  0x2d   :  { %2329 = vmatmul.mubr.msk.f32.vlgmr.msra.gmra.mrb[0].mxu0 %vm120_vm0, %v103_v10  ;;  %2547 = vmatpush3.bf16.msra.mxu1 %v2544_v16  ;;  %v108_v26 = vsub.f32 %v76_v23, %v92_v24  ;;  %v93_v28 = vld [vmem:[#allocation6 + $0x38] sm:$0xff]  ;;  %v94_v30 = vld [vmem:[#allocation6 + $0x40] sm:$0xff]  ;;  %v79_v33 = vld [vmem:[#allocation3 + $0x48] sm:$0xff] }
  0x2e   :  { %2331 = vmatprep.mubr.msk.f32.mxu0 %vm120_vm0, %v104_v13  ;;  %v109_v31 = vsub.f32 %v77_v27, %v93_v28  ;;  %v110_v32 = vsub.f32 %v78_v29, %v94_v30  ;;  %v95_v34 = vld [vmem:[#allocation6 + $0x48] sm:$0xff]  ;;  %v80_v35 = vld [vmem:[#allocation3 + $0x50] sm:$0xff]  ;;  %v81_v39 = vld [vmem:[#allocation3 + $0x58] sm:$0xff] }
  0x2f   :  { %v96_v36 = vld [vmem:[#allocation6 + $0x50] sm:$0xff]  ;;  %v111_v37 = vsub.f32 %v79_v33, %v95_v34  ;;  %v97_v40 = vld [vmem:[#allocation6 + $0x58] sm:$0xff]  ;;  %v82_v41 = vld [vmem:[#allocation3 + $0x60] sm:$0xff] }
  0x30   :  { %2357 = vmatmul.mubr.msk.f32.vlgmr.msra.gmra.mrb[0].mxu1 %vm120_vm0, %v103_v10  ;;  %v112_v38 = vsub.f32 %v80_v35, %v96_v36  ;;  %v98_v42 = vld [vmem:[#allocation6 + $0x60] sm:$0xff]  ;;  %v113_v43 = vsub.f32 %v81_v39, %v97_v40  ;;  %v83_v45 = vld [vmem:[#allocation3 + $0x68] sm:$0xff]  ;;  %v84_v47 = vld [vmem:[#allocation3 + $0x70] sm:$0xff] }
  0x31   :  { %2332 = vmatmul.mubr.msk.f32.gmra.mrb[2].mxu0 %vm120_vm0, %v105_v19  ;;  %2359 = vmatprep.mubr.msk.f32.mxu1 %vm120_vm0, %v104_v13  ;;  %v114_v44 = vsub.f32 %v82_v41, %v98_v42  ;;  %v99_v46 = vld [vmem:[#allocation6 + $0x68] sm:$0xff]  ;;  %v100_v48 = vld [vmem:[#allocation6 + $0x70] sm:$0xff]  ;;  %v85_v51 = vld [vmem:[#allocation3 + $0x78] sm:$0xff]  ;;  %v2745_v42 = vmov 0.0  }
  0x32   :  { %2334 = vmatprep.mubr.msk.f32.mxu0 %vm120_vm0, %v106_v20  ;;  %v115_v49 = vsub.f32 %v83_v45, %v99_v46  ;;  %v116_v50 = vsub.f32 %v84_v47, %v100_v48  ;;  %v101_v52 = vld [vmem:[#allocation6 + $0x78] sm:$0xff]  ;;  %v2849_v54 = vld [vmem:[%s3045_s4] sm:$0xff]  ;;  %v2863_v1 = vld [vmem:[%s3045_s4 + $0x10] sm:$0xff]  ;;  %68 = vst.msk [vmem:[#allocation2] sm:$0xff] %vm67_vm1, %v2745_v42 }
  0x33   :  { %v117_v53 = vsub.f32 %v85_v51, %v101_v52  ;;  %v2858_v62 = vld [vmem:[%s3045_s4 + $0x8] sm:$0xff]  ;;  %v2872_v5 = vld [vmem:[%s3045_s4 + $0x18] sm:$0xff]  ;;  %69 = vst.msk [vmem:[#allocation2 + $0x8] sm:$0xff] %vm67_vm1, %v2745_v42  ;;  %s2747_s4 = smov [#allocation8]  }
  0x34   :  { %2360 = vmatmul.mubr.msk.f32.gmra.mrb[2].mxu1 %vm120_vm0, %v105_v19  ;;  %s2086_s6 = sshll.u32 %s2747_s4, 4  ;;  %s2087_s6 = int_to_ptr.vmem [resolvable:$true] %s2086_s6 }
  0x35   :  { %2335 = vmatmul.mubr.msk.f32.gmra.mrb[4].mxu0 %vm120_vm0, %v107_v25  ;;  %2362 = vmatprep.mubr.msk.f32.mxu1 %vm120_vm0, %v106_v20  ;;  %s2713_s8 = scalar_lea.vmem %s2087_s6, 16  ;;  %s2717_s9 = scalar_lea.vmem %s2087_s6, 32 }
  0x36   :  { %2337 = vmatprep.mubr.msk.f32.mxu0 %vm120_vm0, %v108_v26  ;;  %p2714_p2 = scmp.ne.s32.totalorder %s2087_s6, %s2713_s8  ;;  %p2718_p3 = scmp.lt.s32.totalorder %s2087_s6, %s2087_s6 }
  0x37   :  { %p2719_p4 = scmp.lt.s32.totalorder %s2717_s9, %s2713_s8 }
  0x38   :  { %2363 = vmatmul.mubr.msk.f32.gmra.mrb[4].mxu1 %vm120_vm0, %v107_v25 }
  0x39   :  { %2338 = vmatmul.mubr.msk.f32.gmra.mrb[6].mxu0 %vm120_vm0, %v109_v31  ;;  %2365 = vmatprep.mubr.msk.f32.mxu1 %vm120_vm0, %v108_v26  ;;  %p2720_p5 = por %p2719_p4, %p2718_p3 }
  0x3a   :  { %2340 = vmatprep.mubr.msk.f32.mxu0 %vm120_vm0, %v110_v32 }
  0x3b   :  { %p2721_p6 = pnand %p2720_p5, %p2714_p2 }
  0x3c   :  { %2366 = vmatmul.mubr.msk.f32.gmra.mrb[6].mxu1 %vm120_vm0, %v109_v31 }
  0x3d   :  { %2341 = vmatmul.mubr.msk.f32.gmra.mrb[8].mxu0 %vm120_vm0, %v111_v37  ;;  %2368 = vmatprep.mubr.msk.f32.mxu1 %vm120_vm0, %v110_v32 }
  0x3e   :  { %2343 = vmatprep.mubr.msk.f32.mxu0 %vm120_vm0, %v112_v38 }
  0x40   :  { %2369 = vmatmul.mubr.msk.f32.gmra.mrb[8].mxu1 %vm120_vm0, %v111_v37 }
  0x41   :  { %2344 = vmatmul.mubr.msk.f32.gmra.mrb[10].mxu0 %vm120_vm0, %v113_v43  ;;  %2371 = vmatprep.mubr.msk.f32.mxu1 %vm120_vm0, %v112_v38 }
  0x42   :  { %2346 = vmatprep.mubr.msk.f32.mxu0 %vm120_vm0, %v114_v44 }
  0x44   :  { %2372 = vmatmul.mubr.msk.f32.gmra.mrb[10].mxu1 %vm120_vm0, %v113_v43 }
  0x45   :  { %2347 = vmatmul.mubr.msk.f32.gmra.mrb[12].mxu0 %vm120_vm0, %v115_v49  ;;  %2374 = vmatprep.mubr.msk.f32.mxu1 %vm120_vm0, %v114_v44 }
  0x46   :  { %2349 = vmatprep.mubr.msk.f32.mxu0 %vm120_vm0, %v116_v50 }
  0x48   :  { %2375 = vmatmul.mubr.msk.f32.gmra.mrb[12].mxu1 %vm120_vm0, %v115_v49 }
  0x49   :  { %2350 = vmatmul.mubr.msk.f32.gmra.mrb[14].mxu0 %vm120_vm0, %v117_v53  ;;  %2377 = vmatprep.mubr.msk.f32.mxu1 %vm120_vm0, %v116_v50 }
  0x4a   :  { %2384 = vmatprep.mubr.msk.f32.mxu0 %vm120_vm0, %v2849_v54 }
  0x4c   :  { %2378 = vmatmul.mubr.msk.f32.gmra.mrb[14].mxu1 %vm120_vm0, %v117_v53 }
  0x4d   :  { %2404 = vmatprep.mubr.msk.f32.mxu1 %vm120_vm0, %v2849_v54 }
 0x100   :  { %v2330_v55 = vpop.f32.mrb[0].mxu0 }
 0x101   :  { %v235_v56 = vpop.f32.mrb[1].mxu0 }
 0x102   :  { %v2548_v57 = vpack.c.bf16 %v2330_v55, %v235_v56 }
 0x103   :  { %v2358_v58 = vpop.f32.mrb[0].mxu1 }
 0x104   :  { %v2333_v59 = vpop.f32.mrb[2].mxu0  ;;  %2549 = vmatprep.subr.bf16.mxu0 %v2548_v57  ;;  %v382_v60 = vpop.f32.mrb[1].mxu1 }
 0x105   :  { %v245_v61 = vpop.f32.mrb[3].mxu0  ;;  %2551 = vmatpush3.bf16.msra.mxu0 %v2548_v57  ;;  %v2552_v63 = vpack.c.bf16 %v2358_v58, %v382_v60 }
 0x106   :  { %v2556_v0 = vpack.c.bf16 %v2333_v59, %v245_v61 }
 0x107   :  { %v2361_v2 = vpop.f32.mrb[2].mxu1  ;;  %2553 = vmatprep.subr.bf16.mxu0 %v2552_v63 }
 0x108   :  { %2385 = vmatmul.mubr.msk.f32.vlgmr.msra.gmra.mrb[16].mxu0 %vm120_vm0, %v2858_v62  ;;  %2557 = vmatprep.subr.bf16.mxu1 %v2556_v0  ;;  %v392_v3 = vpop.f32.mrb[3].mxu1  ;;  %v2336_v4 = vpop.f32.mrb[4].mxu0 }
 0x109   :  { %2559 = vmatpush3.bf16.msra.mxu1 %v2556_v0  ;;  %2387 = vmatprep.mubr.msk.f32.mxu0 %vm120_vm0, %v2863_v1  ;;  %v2560_v6 = vpack.c.bf16 %v2361_v2, %v392_v3  ;;  %v255_v7 = vpop.f32.mrb[5].mxu0 }
 0x10a   :  { %2555 = vmatpush3.bf16.msra.mxu0 %v2552_v63  ;;  %v2564_v8 = vpack.c.bf16 %v2336_v4, %v255_v7 }
 0x10b   :  { %2561 = vmatprep.subr.bf16.mxu1 %v2560_v6  ;;  %v2364_v9 = vpop.f32.mrb[4].mxu1 }
 0x10c   :  { %2388 = vmatmul.mubr.msk.f32.gmra.mrb[18].mxu0 %vm120_vm0, %v2872_v5  ;;  %2405 = vmatmul.mubr.msk.f32.vlgmr.msra.gmra.mrb[16].mxu1 %vm120_vm0, %v2858_v62  ;;  %v2339_v10 = vpop.f32.mrb[6].mxu0  ;;  %v402_v11 = vpop.f32.mrb[5].mxu1 }
 0x10d   :  { %2407 = vmatprep.mubr.msk.f32.mxu1 %vm120_vm0, %v2863_v1  ;;  %2394 = vmatprep.mubr.msk.f32.mxu0 %vm120_vm0, %v2849_v54  ;;  %v265_v12 = vpop.f32.mrb[7].mxu0  ;;  %v2568_v13 = vpack.c.bf16 %v2364_v9, %v402_v11 }
 0x10e   :  { %2563 = vmatpush3.bf16.msra.mxu1 %v2560_v6  ;;  %2565 = vmatprep.subr.bf16.mxu0 %v2564_v8  ;;  %v2572_v14 = vpack.c.bf16 %v2339_v10, %v265_v12 }
 0x10f   :  { %v2367_v15 = vpop.f32.mrb[6].mxu1 }
 0x110   :  { %2408 = vmatmul.mubr.msk.f32.gmra.mrb[18].mxu1 %vm120_vm0, %v2872_v5  ;;  %2573 = vmatprep.subr.bf16.mxu1 %v2572_v14  ;;  %v412_v16 = vpop.f32.mrb[7].mxu1  ;;  %v2342_v17 = vpop.f32.mrb[8].mxu0 }
 0x111   :  { %2414 = vmatprep.mubr.msk.f32.mxu1 %vm120_vm0, %v2849_v54  ;;  %v2576_v18 = vpack.c.bf16 %v2367_v15, %v412_v16  ;;  %v275_v19 = vpop.f32.mrb[9].mxu0 }
 0x112   :  { %v2580_v20 = vpack.c.bf16 %v2342_v17, %v275_v19 }
 0x113   :  { %v2370_v21 = vpop.f32.mrb[8].mxu1 }
 0x114   :  { %2395 = vmatmul.mubr.msk.f32.vlgmr.msra.gmra.mrb[18].mxu0 %vm120_vm0, %v2858_v62  ;;  %v2345_v22 = vpop.f32.mrb[10].mxu0  ;;  %v422_v23 = vpop.f32.mrb[9].mxu1 }
 0x115   :  { %2397 = vmatprep.mubr.msk.f32.mxu0 %vm120_vm0, %v2863_v1  ;;  %2567 = vmatpush3.bf16.msra.mxu0 %v2564_v8  ;;  %v285_v24 = vpop.f32.mrb[11].mxu0  ;;  %v2584_v25 = vpack.c.bf16 %v2370_v21, %v422_v23 }
 0x116   :  { %2569 = vmatprep.subr.bf16.mxu0 %v2568_v13  ;;  %v2588_v26 = vpack.c.bf16 %v2345_v22, %v285_v24 }
 0x117   :  { %v2373_v27 = vpop.f32.mrb[10].mxu1 }
 0x118   :  { %2398 = vmatmul.mubr.msk.f32.gmra.mrb[20].mxu0 %vm120_vm0, %v2872_v5  ;;  %2415 = vmatmul.mubr.msk.f32.vlgmr.msra.gmra.mrb[18].mxu1 %vm120_vm0, %v2858_v62  ;;  %v432_v28 = vpop.f32.mrb[11].mxu1  ;;  %v2348_v29 = vpop.f32.mrb[12].mxu0 }
 0x119   :  { %2417 = vmatprep.mubr.msk.f32.mxu1 %vm120_vm0, %v2863_v1  ;;  %2424 = vmatprep.mubr.msk.f32.mxu0 %vm120_vm0, %v2849_v54  ;;  %v2592_v30 = vpack.c.bf16 %v2373_v27, %v432_v28  ;;  %v295_v31 = vpop.f32.mrb[13].mxu0 }
 0x11a   :  { %2575 = vmatpush3.bf16.msra.mxu1 %v2572_v14  ;;  %v2596_v32 = vpack.c.bf16 %v2348_v29, %v295_v31 }
 0x11b   :  { %2577 = vmatprep.subr.bf16.mxu1 %v2576_v18  ;;  %v2376_v33 = vpop.f32.mrb[12].mxu1 }
 0x11c   :  { %2418 = vmatmul.mubr.msk.f32.gmra.mrb[20].mxu1 %vm120_vm0, %v2872_v5  ;;  %2425 = vmatmul.mubr.msk.f32.vlgmr.msra.gmra.mrb[22].mxu0 %vm120_vm0, %v2858_v62  ;;  %v2351_v34 = vpop.f32.mrb[14].mxu0  ;;  %v442_v35 = vpop.f32.mrb[13].mxu1 }
 0x11d   :  { %2427 = vmatprep.mubr.msk.f32.mxu0 %vm120_vm0, %v2863_v1  ;;  %2444 = vmatprep.mubr.msk.f32.mxu1 %vm120_vm0, %v2849_v54  ;;  %v305_v36 = vpop.f32.mrb[15].mxu0  ;;  %v2600_v37 = vpack.c.bf16 %v2376_v33, %v442_v35 }
 0x11e   :  { %2571 = vmatpush3.bf16.msra.mxu0 %v2568_v13  ;;  %v2604_v38 = vpack.c.bf16 %v2351_v34, %v305_v36 }
 0x11f   :  { %2581 = vmatprep.subr.bf16.mxu0 %v2580_v20  ;;  %v2379_v39 = vpop.f32.mrb[14].mxu1 }
 0x120   :  { %2428 = vmatmul.mubr.msk.f32.gmra.mrb[24].mxu0 %vm120_vm0, %v2872_v5  ;;  %2445 = vmatmul.mubr.msk.f32.vlgmr.msra.gmra.mrb[22].mxu1 %vm120_vm0, %v2858_v62  ;;  %v452_v40 = vpop.f32.mrb[15].mxu1 }
 0x121   :  { %2447 = vmatprep.mubr.msk.f32.mxu1 %vm120_vm0, %v2863_v1  ;;  %2434 = vmatprep.mubr.msk.f32.mxu0 %vm120_vm0, %v2849_v54  ;;  %v2608_v41 = vpack.c.bf16 %v2379_v39, %v452_v40 }
 0x122   :  { %2579 = vmatpush3.bf16.msra.mxu1 %v2576_v18 }
 0x123   :  { %2589 = vmatprep.subr.bf16.mxu1 %v2588_v26 }
 0x124   :  { %2448 = vmatmul.mubr.msk.f32.gmra.mrb[24].mxu1 %vm120_vm0, %v2872_v5 }
 0x125   :  { %2454 = vmatprep.mubr.msk.f32.mxu1 %vm120_vm0, %v2849_v54 }
 0x128   :  { %2435 = vmatmul.mubr.msk.f32.vlgmr.msra.gmra.mrb[24].mxu0 %vm120_vm0, %v2858_v62 }
 0x129   :  { %2437 = vmatprep.mubr.msk.f32.mxu0 %vm120_vm0, %v2863_v1  ;;  %2583 = vmatpush3.bf16.msra.mxu0 %v2580_v20 }
 0x12a   :  { %2585 = vmatprep.subr.bf16.mxu0 %v2584_v25 }
 0x12c   :  { %2438 = vmatmul.mubr.msk.f32.gmra.mrb[26].mxu0 %vm120_vm0, %v2872_v5  ;;  %2455 = vmatmul.mubr.msk.f32.vlgmr.msra.gmra.mrb[24].mxu1 %vm120_vm0, %v2858_v62 }
 0x12d   :  { %2457 = vmatprep.mubr.msk.f32.mxu1 %vm120_vm0, %v2863_v1  ;;  %2464 = vmatprep.mubr.msk.f32.mxu0 %vm120_vm0, %v2849_v54 }
 0x12e   :  { %2591 = vmatpush3.bf16.msra.mxu1 %v2588_v26 }
 0x12f   :  { %2593 = vmatprep.subr.bf16.mxu1 %v2592_v30 }
 0x130   :  { %2458 = vmatmul.mubr.msk.f32.gmra.mrb[26].mxu1 %vm120_vm0, %v2872_v5  ;;  %2465 = vmatmul.mubr.msk.f32.vlgmr.msra.gmra.mrb[28].mxu0 %vm120_vm0, %v2858_v62 }
 0x131   :  { %2467 = vmatprep.mubr.msk.f32.mxu0 %vm120_vm0, %v2863_v1  ;;  %2484 = vmatprep.mubr.msk.f32.mxu1 %vm120_vm0, %v2849_v54 }
 0x132   :  { %2587 = vmatpush3.bf16.msra.mxu0 %v2584_v25 }
 0x133   :  { %2597 = vmatprep.subr.bf16.mxu0 %v2596_v32 }
 0x134   :  { %2468 = vmatmul.mubr.msk.f32.gmra.mrb[30].mxu0 %vm120_vm0, %v2872_v5  ;;  %2485 = vmatmul.mubr.msk.f32.vlgmr.msra.gmra.mrb[28].mxu1 %vm120_vm0, %v2858_v62 }
 0x135   :  { %2487 = vmatprep.mubr.msk.f32.mxu1 %vm120_vm0, %v2863_v1  ;;  %2474 = vmatprep.mubr.msk.f32.mxu0 %vm120_vm0, %v2849_v54 }
 0x136   :  { %2595 = vmatpush3.bf16.msra.mxu1 %v2592_v30 }
 0x137   :  { %2605 = vmatprep.subr.bf16.mxu1 %v2604_v38 }
 0x138   :  { %2488 = vmatmul.mubr.msk.f32.gmra.mrb[30].mxu1 %vm120_vm0, %v2872_v5 }
 0x139   :  { %2494 = vmatprep.mubr.msk.f32.mxu1 %vm120_vm0, %v2849_v54 }
 0x13c   :  { %2475 = vmatmul.mubr.msk.f32.vlgmr.msra.gmra.mrb[30].mxu0 %vm120_vm0, %v2858_v62 }
 0x13d   :  { %2477 = vmatprep.mubr.msk.f32.mxu0 %vm120_vm0, %v2863_v1  ;;  %2599 = vmatpush3.bf16.msra.mxu0 %v2596_v32 }
 0x13e   :  { %2601 = vmatprep.subr.bf16.mxu0 %v2600_v37 }
 0x140   :  { %2478 = vmatmul.mubr.msk.f32.gmra.mrb[32].mxu0 %vm120_vm0, %v2872_v5  ;;  %2495 = vmatmul.mubr.msk.f32.vlgmr.msra.gmra.mrb[30].mxu1 %vm120_vm0, %v2858_v62 }
 0x141   :  { %2497 = vmatprep.mubr.msk.f32.mxu1 %vm120_vm0, %v2863_v1  ;;  %2504 = vmatprep.mubr.msk.f32.mxu0 %vm120_vm0, %v2849_v54 }
 0x142   :  { %2607 = vmatpush3.bf16.msra.mxu1 %v2604_v38 }
 0x143   :  { %2609 = vmatprep.subr.bf16.mxu1 %v2608_v41 }
 0x144   :  { %2498 = vmatmul.mubr.msk.f32.gmra.mrb[32].mxu1 %vm120_vm0, %v2872_v5  ;;  %2505 = vmatmul.mubr.msk.f32.vlgmr.msra.gmra.mrb[34].mxu0 %vm120_vm0, %v2858_v62 }
 0x145   :  { %2507 = vmatprep.mubr.msk.f32.mxu0 %vm120_vm0, %v2863_v1  ;;  %2524 = vmatprep.mubr.msk.f32.mxu1 %vm120_vm0, %v2849_v54 }
 0x146   :  { %2603 = vmatpush3.bf16.msra.mxu0 %v2600_v37 }
 0x148   :  { %2508 = vmatmul.mubr.msk.f32.gmra.mrb[36].mxu0 %vm120_vm0, %v2872_v5  ;;  %2525 = vmatmul.mubr.msk.f32.vlgmr.msra.gmra.mrb[34].mxu1 %vm120_vm0, %v2858_v62 }
 0x149   :  { %2527 = vmatprep.mubr.msk.f32.mxu1 %vm120_vm0, %v2863_v1  ;;  %2514 = vmatprep.mubr.msk.f32.mxu0 %vm120_vm0, %v2849_v54 }
 0x14a   :  { %2611 = vmatpush3.bf16.msra.mxu1 %v2608_v41 }
 0x14c   :  { %2528 = vmatmul.mubr.msk.f32.gmra.mrb[36].mxu1 %vm120_vm0, %v2872_v5 }
 0x14d   :  { %2534 = vmatprep.mubr.msk.f32.mxu1 %vm120_vm0, %v2849_v54 }
 0x150   :  { %2515 = vmatmul.mubr.msk.f32.vlgmr.msra.gmra.mrb[36].mxu0 %vm120_vm0, %v2858_v62 }
 0x151   :  { %2517 = vmatprep.mubr.msk.f32.mxu0 %vm120_vm0, %v2863_v1 }
 0x154   :  { %2518 = vmatmul.mubr.msk.f32.gmra.mrb[38].mxu0 %vm120_vm0, %v2872_v5  ;;  %2535 = vmatmul.mubr.msk.f32.vlgmr.msra.gmra.mrb[36].mxu1 %vm120_vm0, %v2858_v62 }
 0x155   :  { %2537 = vmatprep.mubr.msk.f32.mxu1 %vm120_vm0, %v2863_v1 }
 0x158   :  { %2538 = vmatmul.mubr.msk.f32.gmra.mrb[38].mxu1 %vm120_vm0, %v2872_v5 }
 0x1db   :  { %v2386_v43 = vpop.f32.mrb[16].mxu0 }
 0x1dc   :  { %v543_v44 = vpop.f32.mrb[17].mxu0 }
 0x1df   :  { %v2406_v45 = vpop.f32.mrb[16].mxu1 }
 0x1e0   :  { %v739_v46 = vpop.f32.mrb[17].mxu1 }
 0x1e7   :  { %v2396_v47 = vpop.f32.mrb[18].mxu0 }
 0x1e8   :  { %v628_v48 = vpop.f32.mrb[19].mxu0  ;;  %v654_v55 = vmul.f32 %v2396_v47, %v2396_v47 }
 0x1e9   :  { %v653_v57 = vmul.f32 %v628_v48, %v628_v48 }
 0x1eb   :  { %v2399_v49 = vpop.f32.mrb[20].mxu0  ;;  %v2416_v50 = vpop.f32.mrb[18].mxu1 }
 0x1ec   :  { %v648_v51 = vsub.f32 %v2386_v43, %v2399_v49  ;;  %v638_v52 = vpop.f32.mrb[21].mxu0  ;;  %v824_v53 = vpop.f32.mrb[19].mxu1  ;;  %v850_v4 = vmul.f32 %v2416_v50, %v2416_v50 }
 0x1ed   :  { %v647_v54 = vsub.f32 %v543_v44, %v638_v52  ;;  %v849_v5 = vmul.f32 %v824_v53, %v824_v53 }
 0x1ee   :  { %v652_v56 = vmul.f32 %v648_v51, %v648_v51 }
 0x1ef   :  { %v651_v58 = vmul.f32 %v647_v54, %v647_v54  ;;  %v2419_v59 = vpop.f32.mrb[20].mxu1  ;;  %v2426_v60 = vpop.f32.mrb[22].mxu0 }
 0x1f0   :  { %v2996_v61 = vadd.f32 %v654_v55, %v652_v56  ;;  %v844_v62 = vsub.f32 %v2406_v45, %v2419_v59  ;;  %v834_v63 = vpop.f32.mrb[21].mxu1  ;;  %v935_v0 = vpop.f32.mrb[23].mxu0 }
 0x1f1   :  { %v2998_v1 = vadd.f32 %v653_v57, %v651_v58  ;;  %v843_v2 = vsub.f32 %v739_v46, %v834_v63 }
 0x1f2   :  { %2637 = vrsqrt.f32 %v2996_v61  ;;  %v848_v6 = vmul.f32 %v844_v62, %v844_v62  ;;  %vm666_vm2 = vcmp.eq.f32.partialorder %v2996_v61, inf  ;;  %vm668_vm3 = vcmp.eq.f32.partialorder %v2996_v61, 0.0 }
 0x1f3   :  { %2639 = vrsqrt.f32 %v2998_v1  ;;  %v2446_v3 = vpop.f32.mrb[22].mxu1  ;;  %v847_v7 = vmul.f32 %v843_v2, %v843_v2  ;;  %v669_v16 = vand.u32 2147483648, %v2996_v61  ;;  %vm659_vm4 = vcmp.eq.f32.partialorder %v2998_v1, inf }
 0x1f4   :  { %v1131_v8 = vpop.f32.mrb[23].mxu1  ;;  %v852_v9 = vadd.f32 %v850_v4, %v848_v6  ;;  %vm661_vm5 = vcmp.eq.f32.partialorder %v2998_v1, 0.0  ;;  %v662_v20 = vand.u32 2147483648, %v2998_v1 }
 0x1f5   :  { %v851_v10 = vadd.f32 %v849_v5, %v847_v7 }
 0x1f6   :  { %2641 = vrsqrt.f32 %v852_v9  ;;  %vm862_vm6 = vcmp.eq.f32.partialorder %v852_v9, inf  ;;  %vm864_vm7 = vcmp.eq.f32.partialorder %v852_v9, 0.0  ;;  %v865_v24 = vand.u32 2147483648, %v852_v9 }
 0x1f7   :  { %2643 = vrsqrt.f32 %v851_v10  ;;  %vm855_vm8 = vcmp.eq.f32.partialorder %v851_v10, inf  ;;  %vm857_vm9 = vcmp.eq.f32.partialorder %v851_v10, 0.0  ;;  %v858_v43 = vand.u32 2147483648, %v851_v10 }
 0x1fb   :  { %v2436_v11 = vpop.f32.mrb[24].mxu0 }
 0x1fc   :  { %v2638_v12 = vpop.eup %2637  ;;  %v1020_v13 = vpop.f32.mrb[25].mxu0  ;;  %v1046_v27 = vmul.f32 %v2436_v11, %v2436_v11 }
 0x1fd   :  { %v2640_v14 = vpop.eup %2639  ;;  %v665_v15 = vmul.f32 %v2638_v12, %v2996_v61  ;;  %v1045_v32 = vmul.f32 %v1020_v13, %v1020_v13 }
 0x1fe   :  { %v658_v19 = vmul.f32 %v2640_v14, %v2998_v1 }
 0x1ff   :  { %v2439_v17 = vpop.f32.mrb[26].mxu0  ;;  %v2456_v18 = vpop.f32.mrb[24].mxu1  ;;  %v667_v30 = vsel %vm666_vm2, %v2996_v61, %v665_v15 }
 0x200   :  { %v1040_v21 = vsub.f32 %v2426_v60, %v2439_v17  ;;  %v1030_v22 = vpop.f32.mrb[27].mxu0  ;;  %v1216_v23 = vpop.f32.mrb[25].mxu1  ;;  %v660_v36 = vsel %vm659_vm4, %v2998_v1, %v658_v19  ;;  %v670_v46 = vsel %vm668_vm3, %v669_v16, %v667_v30  ;;  %v1242_v55 = vmul.f32 %v2456_v18, %v2456_v18 }
 0x201   :  { %v1039_v25 = vsub.f32 %v935_v0, %v1030_v22  ;;  %v2642_v26 = vpop.eup %2641  ;;  %v663_v49 = vsel %vm661_vm5, %v662_v20, %v660_v36  ;;  %v1241_v56 = vmul.f32 %v1216_v23, %v1216_v23 }
 0x202   :  { %v1044_v28 = vmul.f32 %v1040_v21, %v1040_v21  ;;  %v2644_v29 = vpop.eup %2643  ;;  %v861_v31 = vmul.f32 %v2642_v26, %v852_v9 }
 0x203   :  { %v1043_v33 = vmul.f32 %v1039_v25, %v1039_v25  ;;  %v2459_v34 = vpop.f32.mrb[26].mxu1  ;;  %v2466_v35 = vpop.f32.mrb[28].mxu0  ;;  %v854_v37 = vmul.f32 %v2644_v29, %v851_v10 }
 0x204   :  { %v1048_v38 = vadd.f32 %v1046_v27, %v1044_v28  ;;  %v1236_v39 = vsub.f32 %v2446_v3, %v2459_v34  ;;  %v1226_v40 = vpop.f32.mrb[27].mxu1  ;;  %v1327_v41 = vpop.f32.mrb[29].mxu0  ;;  %v863_v42 = vsel %vm862_vm6, %v852_v9, %v861_v31 }
 0x205   :  { %v1047_v44 = vadd.f32 %v1045_v32, %v1043_v33  ;;  %v1235_v45 = vsub.f32 %v1131_v8, %v1226_v40  ;;  %v866_v47 = vsel %vm864_vm7, %v865_v24, %v863_v42  ;;  %v856_v48 = vsel %vm855_vm8, %v851_v10, %v854_v37 }
 0x206   :  { %2645 = vrsqrt.f32 %v1048_v38  ;;  %v868_v50 = vadd.f32 %v866_v47, %v670_v46  ;;  %v859_v51 = vsel %vm857_vm9, %v858_v43, %v856_v48  ;;  %v1240_v57 = vmul.f32 %v1236_v39, %v1236_v39 }
 0x207   :  { %v2486_v52 = vpop.f32.mrb[28].mxu1  ;;  %v867_v53 = vadd.f32 %v859_v51, %v663_v49  ;;  %2647 = vrsqrt.f32 %v1047_v44  ;;  %v1239_v58 = vmul.f32 %v1235_v45, %v1235_v45  ;;  %vm1058_vm10 = vcmp.eq.f32.partialorder %v1048_v38, inf }
 0x208   :  { %v1523_v54 = vpop.f32.mrb[29].mxu1  ;;  %v1244_v59 = vadd.f32 %v1242_v55, %v1240_v57  ;;  %v1061_v2 = vand.u32 2147483648, %v1048_v38  ;;  %vm1060_vm11 = vcmp.eq.f32.partialorder %v1048_v38, 0.0  ;;  %vm1051_vm12 = vcmp.eq.f32.partialorder %v1047_v44, inf }
 0x209   :  { %v1243_v60 = vadd.f32 %v1241_v56, %v1239_v58  ;;  %v1054_v8 = vand.u32 2147483648, %v1047_v44  ;;  %vm1053_vm13 = vcmp.eq.f32.partialorder %v1047_v44, 0.0 }
 0x20a   :  { %2649 = vrsqrt.f32 %v1244_v59  ;;  %vm1254_vm14 = vcmp.eq.f32.partialorder %v1244_v59, inf  ;;  %vm1256_vm15 = vcmp.eq.f32.partialorder %v1244_v59, 0.0  ;;  %v1257_v30 = vand.u32 2147483648, %v1244_v59 }
 0x20b   :  { %2651 = vrsqrt.f32 %v1243_v60  ;;  %vm1247_vm0 = vcmp.eq.f32.partialorder %v1243_v60, inf  ;;  %vm1249_vm2 = vcmp.eq.f32.partialorder %v1243_v60, 0.0 }
 0x20f   :  { %v2476_v61 = vpop.f32.mrb[30].mxu0 }
 0x210   :  { %v2646_v62 = vpop.eup %2645  ;;  %v1412_v63 = vpop.f32.mrb[31].mxu0  ;;  %v1438_v16 = vmul.f32 %v2476_v61, %v2476_v61 }
 0x211   :  { %v1057_v0 = vmul.f32 %v2646_v62, %v1048_v38  ;;  %v2648_v1 = vpop.eup %2647  ;;  %v1437_v20 = vmul.f32 %v1412_v63, %v1412_v63 }
 0x212   :  { %v1050_v4 = vmul.f32 %v2648_v1, %v1047_v44 }
 0x213   :  { %v1059_v3 = vsel %vm1058_vm10, %v1048_v38, %v1057_v0  ;;  %v2479_v5 = vpop.f32.mrb[32].mxu0  ;;  %v2496_v6 = vpop.f32.mrb[30].mxu1 }
 0x214   :  { %v1062_v7 = vsel %vm1060_vm11, %v1061_v2, %v1059_v3  ;;  %v1432_v9 = vsub.f32 %v2466_v35, %v2479_v5  ;;  %v1422_v10 = vpop.f32.mrb[33].mxu0  ;;  %v1608_v11 = vpop.f32.mrb[31].mxu1  ;;  %v1052_v13 = vsel %vm1051_vm12, %v1047_v44, %v1050_v4  ;;  %v1250_v35 = vand.u32 2147483648, %v1243_v60 }
 0x215   :  { %v1064_v12 = vadd.f32 %v1062_v7, %v868_v50  ;;  %v1431_v14 = vsub.f32 %v1327_v41, %v1422_v10  ;;  %v1055_v15 = vsel %vm1053_vm13, %v1054_v8, %v1052_v13  ;;  %v2650_v18 = vpop.eup %2649  ;;  %v1634_v41 = vmul.f32 %v2496_v6, %v2496_v6 }
 0x216   :  { %v1436_v17 = vmul.f32 %v1432_v9, %v1432_v9  ;;  %v1063_v19 = vadd.f32 %v1055_v15, %v867_v53  ;;  %v2652_v24 = vpop.eup %2651  ;;  %v1253_v25 = vmul.f32 %v2650_v18, %v1244_v59  ;;  %v1633_v44 = vmul.f32 %v1608_v11, %v1608_v11 }
 0x217   :  { %v1435_v21 = vmul.f32 %v1431_v14, %v1431_v14  ;;  %v2499_v22 = vpop.f32.mrb[32].mxu1  ;;  %v2506_v23 = vpop.f32.mrb[34].mxu0  ;;  %v1246_v31 = vmul.f32 %v2652_v24, %v1243_v60 }
 0x218   :  { %v1440_v26 = vadd.f32 %v1438_v16, %v1436_v17  ;;  %v1628_v27 = vsub.f32 %v2486_v52, %v2499_v22  ;;  %v1618_v28 = vpop.f32.mrb[33].mxu1  ;;  %v1719_v29 = vpop.f32.mrb[35].mxu0  ;;  %v1255_v34 = vsel %vm1254_vm14, %v1244_v59, %v1253_v25 }
 0x219   :  { %v1439_v32 = vadd.f32 %v1437_v20, %v1435_v21  ;;  %v1627_v33 = vsub.f32 %v1523_v54, %v1618_v28  ;;  %v1258_v36 = vsel %vm1256_vm15, %v1257_v30, %v1255_v34  ;;  %v1248_v37 = vsel %vm1247_vm0, %v1243_v60, %v1246_v31 }
 0x21a   :  { %2653 = vrsqrt.f32 %v1440_v26  ;;  %v1260_v39 = vadd.f32 %v1258_v36, %v1064_v12  ;;  %v1251_v40 = vsel %vm1249_vm2, %v1250_v35, %v1248_v37  ;;  %v1632_v45 = vmul.f32 %v1628_v27, %v1628_v27 }
 0x21b   :  { %2655 = vrsqrt.f32 %v1439_v32  ;;  %v2526_v38 = vpop.f32.mrb[34].mxu1  ;;  %v1259_v43 = vadd.f32 %v1251_v40, %v1063_v19  ;;  %v1631_v46 = vmul.f32 %v1627_v33, %v1627_v33  ;;  %vm1450_vm3 = vcmp.eq.f32.partialorder %v1440_v26, inf }
 0x21c   :  { %v1915_v42 = vpop.f32.mrb[35].mxu1  ;;  %v1636_v47 = vadd.f32 %v1634_v41, %v1632_v45  ;;  %v1453_v54 = vand.u32 2147483648, %v1440_v26  ;;  %vm1452_vm4 = vcmp.eq.f32.partialorder %v1440_v26, 0.0  ;;  %vm1443_vm5 = vcmp.eq.f32.partialorder %v1439_v32, inf }
 0x21d   :  { %v1635_v48 = vadd.f32 %v1633_v44, %v1631_v46  ;;  %v1446_v57 = vand.u32 2147483648, %v1439_v32  ;;  %vm1445_vm6 = vcmp.eq.f32.partialorder %v1439_v32, 0.0  ;;  %v2055_v46 = vlaneseq }
 0x21e   :  { %2657 = vrsqrt.f32 %v1636_v47  ;;  %vm1646_vm7 = vcmp.eq.f32.partialorder %v1636_v47, inf  ;;  %vm1648_vm8 = vcmp.eq.f32.partialorder %v1636_v47, 0.0  ;;  %v1649_v16 = vand.u32 2147483648, %v1636_v47 }
 0x21f   :  { %2659 = vrsqrt.f32 %v1635_v48  ;;  %vm1639_vm9 = vcmp.eq.f32.partialorder %v1635_v48, inf  ;;  %v1642_v21 = vand.u32 2147483648, %v1635_v48  ;;  %vm1641_vm10 = vcmp.eq.f32.partialorder %v1635_v48, 0.0 }
 0x223   :  { %v2516_v49 = vpop.f32.mrb[36].mxu0 }
 0x224   :  { %v2654_v50 = vpop.eup %2653  ;;  %v1804_v51 = vpop.f32.mrb[37].mxu0  ;;  %v1830_v5 = vmul.f32 %v2516_v49, %v2516_v49 }
 0x225   :  { %v2656_v52 = vpop.eup %2655  ;;  %v1449_v53 = vmul.f32 %v2654_v50, %v1440_v26  ;;  %v1829_v8 = vmul.f32 %v1804_v51, %v1804_v51 }
 0x226   :  { %v1442_v55 = vmul.f32 %v2656_v52, %v1439_v32 }
 0x227   :  { %v1451_v56 = vsel %vm1450_vm3, %v1440_v26, %v1449_v53  ;;  %v2519_v58 = vpop.f32.mrb[38].mxu0  ;;  %v2536_v59 = vpop.f32.mrb[36].mxu1 }
 0x228   :  { %v1454_v60 = vsel %vm1452_vm4, %v1453_v54, %v1451_v56  ;;  %v1444_v61 = vsel %vm1443_vm5, %v1439_v32, %v1442_v55  ;;  %v1824_v62 = vsub.f32 %v2506_v23, %v2519_v58  ;;  %v1814_v63 = vpop.f32.mrb[39].mxu0  ;;  %v2000_v0 = vpop.f32.mrb[37].mxu1  ;;  %v2026_v26 = vmul.f32 %v2536_v59, %v2536_v59  ;;  %v2046_v55 = vld [vmem:[#allocation2 + $0x8] sm:$0xff]  ;;  %v2045_v59 = vld [vmem:[#allocation2] sm:$0xff] }
 0x229   :  { %v1456_v1 = vadd.f32 %v1454_v60, %v1260_v39  ;;  %v1447_v2 = vsel %vm1445_vm6, %v1446_v57, %v1444_v61  ;;  %v1823_v3 = vsub.f32 %v1719_v29, %v1814_v63  ;;  %v2658_v7 = vpop.eup %2657  ;;  %v2025_v28 = vmul.f32 %v2000_v0, %v2000_v0 }
 0x22a   :  { %v1455_v4 = vadd.f32 %v1447_v2, %v1259_v43  ;;  %v1828_v6 = vmul.f32 %v1824_v62, %v1824_v62  ;;  %v2660_v11 = vpop.eup %2659  ;;  %v1645_v12 = vmul.f32 %v2658_v7, %v1636_v47  ;;  %v2056_v56 = vand.u32 127, %v2055_v46 }
 0x22b   :  { %v1827_v9 = vmul.f32 %v1823_v3, %v1823_v3  ;;  %v2539_v10 = vpop.f32.mrb[38].mxu1  ;;  %v1638_v17 = vmul.f32 %v2660_v11, %v1635_v48  ;;  %v2746_v63 = vmov 2.0   ;;  %vm2078_vm6 = vcmask 0  }
 0x22c   :  { %v1832_v13 = vadd.f32 %v1830_v5, %v1828_v6  ;;  %v2020_v14 = vsub.f32 %v2526_v38, %v2539_v10  ;;  %v2010_v15 = vpop.f32.mrb[39].mxu1  ;;  %v1647_v20 = vsel %vm1646_vm7, %v1636_v47, %v1645_v12  ;;  %vm2057_vm4 = vcmp.eq.s32.totalorder %v2056_v56, 0 }
 0x22d   :  { %v1831_v18 = vadd.f32 %v1829_v8, %v1827_v9  ;;  %v2019_v19 = vsub.f32 %v1915_v42, %v2010_v15  ;;  %v1650_v22 = vsel %vm1648_vm8, %v1649_v16, %v1647_v20  ;;  %v1640_v23 = vsel %vm1639_vm9, %v1635_v48, %v1638_v17 }
 0x22e   :  { %2661 = vrsqrt.f32 %v1832_v13  ;;  %v1652_v24 = vadd.f32 %v1650_v22, %v1456_v1  ;;  %v1643_v25 = vsel %vm1641_vm10, %v1642_v21, %v1640_v23  ;;  %v2024_v29 = vmul.f32 %v2020_v14, %v2020_v14 }
 0x22f   :  { %2663 = vrsqrt.f32 %v1831_v18  ;;  %v1651_v27 = vadd.f32 %v1643_v25, %v1455_v4  ;;  %v2023_v30 = vmul.f32 %v2019_v19, %v2019_v19  ;;  %vm1842_vm11 = vcmp.eq.f32.partialorder %v1832_v13, inf }
 0x230   :  { %v2028_v31 = vadd.f32 %v2026_v26, %v2024_v29  ;;  %v1845_v36 = vand.u32 2147483648, %v1832_v13  ;;  %vm1844_vm12 = vcmp.eq.f32.partialorder %v1832_v13, 0.0  ;;  %vm1835_vm13 = vcmp.eq.f32.partialorder %v1831_v18, inf }
 0x231   :  { %v2027_v32 = vadd.f32 %v2025_v28, %v2023_v30  ;;  %v1838_v39 = vand.u32 2147483648, %v1831_v18  ;;  %vm1837_vm14 = vcmp.eq.f32.partialorder %v1831_v18, 0.0  ;;  %v2058_v0 = vsel %vm2057_vm4, 1.0, %v2746_v63 }
 0x232   :  { %2665 = vrsqrt.f32 %v2028_v31  ;;  %vm2038_vm15 = vcmp.eq.f32.partialorder %v2028_v31, inf  ;;  %v2041_v49 = vand.u32 2147483648, %v2028_v31  ;;  %vm2040_vm0 = vcmp.eq.f32.partialorder %v2028_v31, 0.0 }
 0x233   :  { %2667 = vrsqrt.f32 %v2027_v32  ;;  %vm2031_vm2 = vcmp.eq.f32.partialorder %v2027_v32, inf  ;;  %v2034_v52 = vand.u32 2147483648, %v2027_v32  ;;  %vm2033_vm3 = vcmp.eq.f32.partialorder %v2027_v32, 0.0 }
 0x234   :  { %vm2059_vm5 = vcmp.eq.s32.totalorder %v2056_v56, 8 }
 0x235   :  { %v2060_v1 = vsel %vm2059_vm5, 1.0, %v2058_v0 }
 0x238   :  { %v2662_v33 = vpop.eup %2661 }
 0x239   :  { %v2664_v34 = vpop.eup %2663  ;;  %v1841_v35 = vmul.f32 %v2662_v33, %v1832_v13 }
 0x23a   :  { %v1834_v37 = vmul.f32 %v2664_v34, %v1831_v18 }
 0x23b   :  { %v1843_v38 = vsel %vm1842_vm11, %v1832_v13, %v1841_v35 }
 0x23c   :  { %v1846_v40 = vsel %vm1844_vm12, %v1845_v36, %v1843_v38  ;;  %v1836_v41 = vsel %vm1835_vm13, %v1831_v18, %v1834_v37  ;;  %v2666_v45 = vpop.eup %2665 }
 0x23d   :  { %v1848_v42 = vadd.f32 %v1846_v40, %v1652_v24  ;;  %v1839_v43 = vsel %vm1837_vm14, %v1838_v39, %v1836_v41  ;;  %v2668_v47 = vpop.eup %2667  ;;  %v2037_v48 = vmul.f32 %v2666_v45, %v2028_v31 }
 0x23e   :  { %v1847_v44 = vadd.f32 %v1839_v43, %v1651_v27  ;;  %v2030_v50 = vmul.f32 %v2668_v47, %v2027_v32 }
 0x23f   :  { %v2039_v51 = vsel %vm2038_vm15, %v2028_v31, %v2037_v48 }
 0x240   :  { %v2042_v53 = vsel %vm2040_vm0, %v2041_v49, %v2039_v51  ;;  %v2032_v54 = vsel %vm2031_vm2, %v2027_v32, %v2030_v50 }
 0x241   :  { %v2044_v57 = vadd.f32 %v2042_v53, %v1848_v42  ;;  %v2035_v58 = vsel %vm2033_vm3, %v2034_v52, %v2032_v54 }
 0x242   :  { %v2043_v60 = vadd.f32 %v2035_v58, %v1847_v44 }
 0x243   :  { %v2048_v61 = vadd.f32 %v2046_v55, %v2044_v57 }
 0x244   :  { %v2047_v62 = vadd.f32 %v2045_v59, %v2043_v60 }
 0x245   :  { %2051 = vst.msk [vmem:[#allocation2 + $0x8] sm:$0xff] %vm67_vm1, %v2048_v61 }
 0x246   :  { %2050 = vst.msk [vmem:[#allocation2] sm:$0xff] %vm67_vm1, %v2047_v62 }
 0x24c   :  { %v2062_v2 = vld [vmem:[#allocation2 + $0x8] sm:$0xff] }
 0x24d   :  { %v2061_v3 = vld [vmem:[#allocation2] sm:$0xff]  ;;  %v2064_v4 = vmul.f32 %v2062_v2, %v2060_v1 }
 0x24e   :  { %v2063_v5 = vmul.f32 %v2061_v3, %v2060_v1 }
 0x24f   :  { %v2066_v6 = vsel %vm67_vm1, %v2064_v4, 0.0 }
 0x250   :  { %v2065_v7 = vsel %vm67_vm1, %v2063_v5, 0.0 }
 0x251   :  { %v2067_v8 = vadd.f32 %v2066_v6, %v2065_v7 }
 0x253   :  { %2068 = vadd.xlane.f32.xlu0 %v2067_v8 }
 0x2e0   :  { %v2069_v9 = vpop.xlane.xlu0 %2068 }
 0x2e1   :  { %v2070_v10 = vrot.slane %v2069_v9, 4 }
 0x2e3   :  { %v2071_v11 = vadd.f32 %v2070_v10, %v2069_v9 }
 0x2e5   :  { %v2072_v12 = vrot.slane %v2071_v11, 2 }
 0x2e7   :  { %v2073_v13 = vadd.f32 %v2072_v12, %v2071_v11 }
 0x2e9   :  { %v2074_v14 = vrot.slane %v2073_v13, 1 }
 0x2eb   :  { %v2075_v15 = vadd.f32 %v2074_v14, %v2073_v13 }
 0x2ed   :  { %2628 = vpush %v2075_v15 }
 0x31e   :  { %s2629_s7 = spop %2628 }
 0x31f   :  { %v2077_v16 = vstv %s2629_s7 }
 0x320   :  { %2079 = vst.msk [vmem:[#allocation8] sm:$0x1] %vm2078_vm6, %v2077_v16 }
 0x321   :  { %2724 = shalt.err (!%p2721_p6)
}
 0x322   :  { %s2725_s12 = scalar_lea.hbm %s3046_s5, 16 }
 0x323   :  { %p2726_p7 = scmp.ne.s32.totalorder %s3046_s5, %s2725_s12  ;;  %p2729_p8 = scmp.lt.u32.totalorder %s2725_s12, %s3046_s5 }
 0x325   :  { %p2731_p9 = pnand %p2729_p8, %p2726_p7 }
 0x327   :  { %2734 = shalt.err (!%p2731_p9)
}
 0x328   :  { %2089 = dma.vmem_to_hbm [thread:$0]  %s2087_s6, 16, %s3046_s5, [#allocation5]  }
 0x329   :  { %2739 = dma.done.wait [#allocation5], 16  }
 0x32a   :  { %2740 = vsyncadd [#allocation5], 4294967280 }
 0x32b   :  { %2093 = vsyncpa [#allocation4], 1 }
 0x32c   :  { %2094 = vsyncpa [#allocation7], 1 }
 0x32d   :  { %2095 = vsyncpa [#allocation5], 1 }

</bundles_post_ra>
